<compile_context>
chip_gen: v5e
topology: v5e:2x2
jax: 0.10.0
libtpu: 0.0.40
codegen_flags: <defaults>
</compile_context>

<pallas_src>
import jax
import jax.numpy as jnp
from jax.experimental import pallas as pl
from jax.experimental.pallas import tpu as pltpu


def actor_kernel(gumbel_ref, state_ref, w1_ref, b1_ref, w2_ref, b2_ref,
                 probs_ref, decision_ref):
    # ---- MLP: hidden = tanh(state @ W1 + b1); logits = hidden @ W2 + b2 ----
    x = state_ref[...].astype(jnp.float32)           # bf16 HBM read, f32 math
    h = jnp.tanh(
        jnp.dot(x, w1_ref[...], preferred_element_type=jnp.float32)
        + b1_ref[...])
    logits = (jnp.dot(h, w2_ref[...], preferred_element_type=jnp.float32)
              + b2_ref[...])

    # ---- softmax over candidate axis (dim=1), numerically stable ----------
    m = jnp.max(logits, axis=1, keepdims=True)
    e = jnp.exp(logits - m)
    denom = jnp.sum(e, axis=1, keepdims=True)
    # NOTE: approx reciprocal (EUP slot) => rows sum to 1 only to ~1e-3; use an
    # exact divide here if these probs feed log-prob / policy-gradient terms.
    p = e * pl.reciprocal(denom, approx=True)

    if probs_ref.shape == p.shape:                   # trace-time branch
        probs_ref[...] = p                           # plain (tb, E) layout
    else:
        # Lane-dense packed slab: 128//E batch rows per 128-lane output row
        # (VMEM-local reshape; removes masked vst.msk on the write path).
        probs_ref[...] = p.reshape(probs_ref.shape)

    # ---- fused categorical sample (== torch.multinomial(probs, 1)) --------
    # Gumbel-max on this tile's local row 0 with shared pre-drawn noise; every
    # tile writes its own SMEM slot so the batch axis can run "parallel" on
    # v7x.  The wrapper keeps tile 0's value (== global row 0).
    E = logits.shape[1]
    z = logits[0:1, :] + gumbel_ref[...]
    zmax = jnp.max(z, axis=1, keepdims=True)
    idx = jax.lax.broadcasted_iota(jnp.int32, z.shape, 1)
    cand = jnp.where(z >= zmax, idx, jnp.int32(E))   # first argmax (tie->low)
    decision_ref[0, 0] = jnp.min(cand)


def edge_decider_sample(state, w1, b1, w2, b2, gumbel, *, batch_tile=8192):
    """Single pallas_call: MLP -> softmax -> Gumbel-max sample per tile.

    Returns (probs[B, E] float32, decision int32 scalar for global row 0).
    """
    B, H = state.shape
    U = w1.shape[1]
    E = w2.shape[1]

    tb = B if B <= batch_tile else batch_tile
    assert B % tb == 0, "large batches must be a multiple of batch_tile"
    num_tiles = B // tb

    # Lane-dense packed probs layout when the batch permits it (no-op at B=2).
    rows_per_slab = 128 // E if (E <= 128 and 128 % E == 0) else 0
    pack = rows_per_slab > 1 and tb % rows_per_slab == 0
    if pack:
        probs_shape = (B // rows_per_slab, rows_per_slab * E)
        probs_block = (tb // rows_per_slab, rows_per_slab * E)
    else:
        probs_shape = (B, E)
        probs_block = (tb, E)

    cost = pl.CostEstimate(
        flops=2 * B * (H * U + U * E),
        transcendentals=B * (U + E),
        bytes_accessed=(B * H * state.dtype.itemsize
                        + (H * U + U + U * E + E) * 4
                        + B * E * 4 + E * 4 + num_tiles * 4),
    )

    probs, decision = pl.pallas_call(
        actor_kernel,
        out_shape=(
            jax.ShapeDtypeStruct(probs_shape, jnp.float32),
            jax.ShapeDtypeStruct((num_tiles, 1), jnp.int32),
        ),
        grid=(num_tiles,),
        in_specs=[
            pl.BlockSpec((1, E), lambda i: (0, 0)),        # gumbel (resident)
            pl.BlockSpec((tb, H), lambda i: (i, 0)),       # state tile (bf16)
            pl.BlockSpec((H, U), lambda i: (0, 0)),        # W1 (resident)
            pl.BlockSpec((1, U), lambda i: (0, 0)),        # b1 (resident)
            pl.BlockSpec((U, E), lambda i: (0, 0)),        # W2 (resident)
            pl.BlockSpec((1, E), lambda i: (0, 0)),        # b2 (resident)
        ],
        out_specs=(
            pl.BlockSpec(probs_block, lambda i: (i, 0)),   # probs tile
            pl.BlockSpec((1, 1), lambda i: (i, 0),
                         memory_space=pltpu.SMEM),         # per-tile decision
        ),
        compiler_params=pltpu.CompilerParams(
            dimension_semantics=("parallel",)),
        cost_estimate=cost,
    )(gumbel, state, w1, b1, w2, b2)

    if pack:
        probs = probs.reshape(B, E)
    return probs, decision[0, 0]


@jax.jit
def replace_identity_edge_actor_forward(state, params, key):
    """Mirrors ReplaceIdentityEdgeActor.forward(tree): (edge_decision, edge_probs)."""
    # TODO(synk): tree.get_output() (the tree/GNN encoder) is external to this
    # module; the kernel consumes its (B, H) state output directly.
    w1, b1, w2, b2 = params
    E = w2.shape[1]
    # Pre-drawn Gumbel noise; argmax(logits[0] + gumbel) inside the kernel is a
    # categorical sample from softmax(logits[0]) == torch.multinomial(probs,1).
    gumbel = jax.random.gumbel(key, (1, E), dtype=jnp.float32)
    # bf16 state read halves the dominant HBM stream; accumulation stays f32.
    probs, decision = edge_decider_sample(
        state.astype(jnp.bfloat16), w1, b1, w2, b2, gumbel)
    return decision, probs


def init_params(key, encoder_hidden_size, units, num_edge_candidates):
    """init_linear_seq with scheme {'type': 'uniform'}:
       weights ~ U(-0.1, 0.1), biases = 0.  Weights stored as [in, out]."""
    k1, k2 = jax.random.split(key)
    w1 = jax.random.uniform(k1, (encoder_hidden_size, units),
                            minval=-0.1, maxval=0.1, dtype=jnp.float32)
    b1 = jnp.zeros((1, units), jnp.float32)
    w2 = jax.random.uniform(k2, (units, num_edge_candidates),
                            minval=-0.1, maxval=0.1, dtype=jnp.float32)
    b2 = jnp.zeros((1, num_edge_candidates), jnp.float32)
    return w1, b1, w2, b2


if __name__ == "__main__":
    # encoder_hidden_size = 32, one hidden layer of 32 tanh units,
    # 8 edge candidates, batch = 2 (tree.get_output() state).
    B, H, U, E = 2, 32, 32, 8

    root = jax.random.PRNGKey(0)
    k_state, k_params, k_sample = jax.random.split(root, 3)

    state = jax.random.normal(k_state, (B, H), dtype=jnp.float32)
    params = init_params(k_params, H, U, E)

    edge_decision, edge_probs = replace_identity_edge_actor_forward(
        state, params, k_sample)
    jax.block_until_ready((edge_decision, edge_probs))

    # Pure-JAX reference (same bf16 state read; approx reciprocal => 2e-3 tol).
    w1, b1, w2, b2 = params
    xs = state.astype(jnp.bfloat16).astype(jnp.float32)
    ref_probs = jax.nn.softmax(jnp.tanh(xs @ w1 + b1) @ w2 + b2, axis=1)

    assert edge_probs.shape == (B, E)
    assert bool(jnp.all(jnp.abs(jnp.sum(edge_probs, axis=1) - 1.0) < 2e-3))
    assert bool(jnp.max(jnp.abs(edge_probs - ref_probs)) < 2e-3)
    assert 0 <= int(edge_decision) < E

    print("KERNEL_OK")
</pallas_src>

<mosaic_0001>
module attributes {stable_mosaic.version = 11 : i64} {
  func.func @actor_kernel(%arg0: i32, %arg1: memref<1x8xf32, #tpu.memory_space<vmem>>, %arg2: memref<2x32xbf16, #tpu.memory_space<vmem>>, %arg3: memref<32x32xf32, #tpu.memory_space<vmem>>, %arg4: memref<1x32xf32, #tpu.memory_space<vmem>>, %arg5: memref<32x8xf32, #tpu.memory_space<vmem>>, %arg6: memref<1x8xf32, #tpu.memory_space<vmem>>, %arg7: memref<2x8xf32, #tpu.memory_space<vmem>>, %arg8: memref<1x1xi32, #tpu.memory_space<smem>>) attributes {dimension_semantics = [#tpu.dimension_semantics<parallel>], iteration_bounds = array<i64: 1>, scalar_prefetch = 0 : i64, scratch_operands = 0 : i64, tpu.core_type = #tpu.core_type<tc>, window_params = [{pipeline_mode = #tpu.pipeline_mode<synchronous>, transform_indices = @transform_0, window_bounds = array<i64: 1, 8>}, {transform_indices = @transform_1, window_bounds = array<i64: 2, 32>}, {pipeline_mode = #tpu.pipeline_mode<synchronous>, transform_indices = @transform_2, window_bounds = array<i64: 32, 32>}, {pipeline_mode = #tpu.pipeline_mode<synchronous>, transform_indices = @transform_3, window_bounds = array<i64: 1, 32>}, {pipeline_mode = #tpu.pipeline_mode<synchronous>, transform_indices = @transform_4, window_bounds = array<i64: 32, 8>}, {pipeline_mode = #tpu.pipeline_mode<synchronous>, transform_indices = @transform_5, window_bounds = array<i64: 1, 8>}, {transform_indices = @transform_6, window_bounds = array<i64: 2, 8>}, {transform_indices = @transform_7, window_bounds = array<i64: 1, 1>}]} {
    %c0 = arith.constant 0 : index
    %c0_0 = arith.constant 0 : index
    %0 = vector.load %arg2[%c0, %c0_0] : memref<2x32xbf16, #tpu.memory_space<vmem>>, vector<2x32xbf16>
    %1 = arith.extf %0 : vector<2x32xbf16> to vector<2x32xf32>
    %c0_1 = arith.constant 0 : index
    %c0_2 = arith.constant 0 : index
    %2 = vector.load %arg3[%c0_1, %c0_2] : memref<32x32xf32, #tpu.memory_space<vmem>>, vector<32x32xf32>
    %cst = arith.constant dense<0.000000e+00> : vector<2x32xf32>
    %3 = tpu.matmul %1, %2, %cst {dimension_numbers = #tpu.dot_dimension_numbers<[1], [0], [0], [1], [0, 0, 1, 1], [], []>} : vector<2x32xf32>, vector<32x32xf32>, vector<2x32xf32> -> vector<2x32xf32>
    %c0_3 = arith.constant 0 : index
    %c0_4 = arith.constant 0 : index
    %4 = vector.load %arg4[%c0_3, %c0_4] : memref<1x32xf32, #tpu.memory_space<vmem>>, vector<1x32xf32>
    %5 = vector.broadcast %4 : vector<1x32xf32> to vector<2x32xf32>
    %6 = arith.addf %3, %5 : vector<2x32xf32>
    %7 = math.tanh %6 : vector<2x32xf32>
    %c0_5 = arith.constant 0 : index
    %c0_6 = arith.constant 0 : index
    %8 = vector.load %arg5[%c0_5, %c0_6] : memref<32x8xf32, #tpu.memory_space<vmem>>, vector<32x8xf32>
    %cst_7 = arith.constant dense<0.000000e+00> : vector<2x8xf32>
    %9 = tpu.matmul %7, %8, %cst_7 {dimension_numbers = #tpu.dot_dimension_numbers<[1], [0], [0], [1], [0, 0, 1, 1], [], []>} : vector<2x32xf32>, vector<32x8xf32>, vector<2x8xf32> -> vector<2x8xf32>
    %c0_8 = arith.constant 0 : index
    %c0_9 = arith.constant 0 : index
    %10 = vector.load %arg6[%c0_8, %c0_9] : memref<1x8xf32, #tpu.memory_space<vmem>>, vector<1x8xf32>
    %11 = vector.broadcast %10 : vector<1x8xf32> to vector<2x8xf32>
    %12 = arith.addf %9, %11 : vector<2x8xf32>
    %cst_10 = arith.constant dense<0xFF800000> : vector<2xf32>
    %13 = vector.multi_reduction <maximumf>, %12, %cst_10 [1] : vector<2x8xf32> to vector<2xf32>
    %14 = vector.shape_cast %13 : vector<2xf32> to vector<2x1xf32>
    %15 = vector.broadcast %14 : vector<2x1xf32> to vector<2x8xf32>
    %16 = arith.subf %12, %15 : vector<2x8xf32>
    %17 = math.exp %16 : vector<2x8xf32>
    %cst_11 = arith.constant dense<0.000000e+00> : vector<2xf32>
    %18 = vector.multi_reduction <add>, %17, %cst_11 [1] : vector<2x8xf32> to vector<2xf32>
    %19 = vector.shape_cast %18 : vector<2xf32> to vector<2x1xf32>
    %20 = tpu.reciprocal %19 {approx = true} : vector<2x1xf32> -> vector<2x1xf32>
    %21 = vector.broadcast %20 : vector<2x1xf32> to vector<2x8xf32>
    %22 = arith.mulf %17, %21 : vector<2x8xf32>
    %c0_12 = arith.constant 0 : index
    %c0_13 = arith.constant 0 : index
    %23 = vector.load %arg7[%c0_12, %c0_13] : memref<2x8xf32, #tpu.memory_space<vmem>>, vector<2x8xf32>
    tpu.vector_store %arg7[%c0_12, %c0_13], %22 {strides = array<i32>} : memref<2x8xf32, #tpu.memory_space<vmem>>, vector<2x8xf32>,
    %24 = vector.extract_strided_slice %12 {offsets = [0, 0], sizes = [1, 8], strides = [1, 1]} : vector<2x8xf32> to vector<1x8xf32>
    %c0_14 = arith.constant 0 : index
    %c0_15 = arith.constant 0 : index
    %25 = vector.load %arg1[%c0_14, %c0_15] : memref<1x8xf32, #tpu.memory_space<vmem>>, vector<1x8xf32>
    %26 = arith.addf %24, %25 : vector<1x8xf32>
    %cst_16 = arith.constant dense<0xFF800000> : vector<1xf32>
    %27 = vector.multi_reduction <maximumf>, %26, %cst_16 [1] : vector<1x8xf32> to vector<1xf32>
    %28 = vector.shape_cast %27 : vector<1xf32> to vector<1x1xf32>
    %29 = tpu.iota {dimensions = array<i32: 1>} : vector<1x8xi32>
    %30 = vector.broadcast %28 : vector<1x1xf32> to vector<1x8xf32>
    %31 = arith.cmpf oge, %26, %30 : vector<1x8xf32>
    %c8_i32 = arith.constant 8 : i32
    %32 = vector.broadcast %c8_i32 : i32 to vector<1x8xi32>
    %33 = arith.select %31, %29, %32 : vector<1x8xi1>, vector<1x8xi32>
    %34 = vector.shape_cast %33 : vector<1x8xi32> to vector<1x1x8xi32>
    %cst_17 = arith.constant dense<2147483647> : vector<1xi32>
    %35 = vector.multi_reduction <minsi>, %34, %cst_17 [1, 2] : vector<1x1x8xi32> to vector<1xi32>
    %36 = vector.shape_cast %35 : vector<1xi32> to vector<1x1x1xi32>
    %37 = vector.extract %36[0, 0, 0] : i32 from vector<1x1x1xi32>
    %c0_18 = arith.constant 0 : index
    %c0_19 = arith.constant 0 : index
    %38 = memref.load %arg8[%c0_18, %c0_19] : memref<1x1xi32, #tpu.memory_space<smem>>
    memref.store %37, %arg8[%c0_18, %c0_19] : memref<1x1xi32, #tpu.memory_space<smem>>
    return
  }
  func.func @transform_0(%arg0: i32) -> (i32, i32) {
    %c0_i32 = arith.constant 0 : i32
    %c0_i32_0 = arith.constant 0 : i32
    %c0_i32_1 = arith.constant 0 : i32
    return %c0_i32, %c0_i32_0 : i32, i32
  }
  func.func @transform_1(%arg0: i32) -> (i32, i32) {
    %c0_i32 = arith.constant 0 : i32
    %c0_i32_0 = arith.constant 0 : i32
    return %arg0, %c0_i32 : i32, i32
  }
  func.func @transform_2(%arg0: i32) -> (i32, i32) {
    %c0_i32 = arith.constant 0 : i32
    %c0_i32_0 = arith.constant 0 : i32
    %c0_i32_1 = arith.constant 0 : i32
    return %c0_i32, %c0_i32_0 : i32, i32
  }
  func.func @transform_3(%arg0: i32) -> (i32, i32) {
    %c0_i32 = arith.constant 0 : i32
    %c0_i32_0 = arith.constant 0 : i32
    %c0_i32_1 = arith.constant 0 : i32
    return %c0_i32, %c0_i32_0 : i32, i32
  }
  func.func @transform_4(%arg0: i32) -> (i32, i32) {
    %c0_i32 = arith.constant 0 : i32
    %c0_i32_0 = arith.constant 0 : i32
    %c0_i32_1 = arith.constant 0 : i32
    return %c0_i32, %c0_i32_0 : i32, i32
  }
  func.func @transform_5(%arg0: i32) -> (i32, i32) {
    %c0_i32 = arith.constant 0 : i32
    %c0_i32_0 = arith.constant 0 : i32
    %c0_i32_1 = arith.constant 0 : i32
    return %c0_i32, %c0_i32_0 : i32, i32
  }
  func.func @transform_6(%arg0: i32) -> (i32, i32) {
    %c0_i32 = arith.constant 0 : i32
    %c0_i32_0 = arith.constant 0 : i32
    return %arg0, %c0_i32 : i32, i32
  }
  func.func @transform_7(%arg0: i32) -> (i32, i32) {
    %c0_i32 = arith.constant 0 : i32
    %c0_i32_0 = arith.constant 0 : i32
    return %arg0, %c0_i32 : i32, i32
  }
}

</mosaic_0001>

<bundles_post_ra>
// kernel: replace_identity_edge_actor_forward.1
= control target key start
LH: loop header
LB: loop body
LE: loop exit
PB: predicated region body
PF: predicated region fallthrough
CT: control target
= control target key end

     0   :  { %13 = vsyncpa [#allocation3], 0  ;;  %s317_s0 = inlined_call_operand.vmem [shape: f32[1,8], index: 0, kind: input, shape index: {}]   ;;  %s318_s1 = inlined_call_operand.vmem [shape: bf16[2,32], index: 1, kind: input, shape index: {}]   ;;  %s319_s2 = inlined_call_operand.vmem [shape: f32[32,32], index: 2, kind: input, shape index: {}]   ;;  %s320_s3 = inlined_call_operand.vmem [shape: f32[1,32], index: 3, kind: input, shape index: {}]   ;;  %s321_s4 = inlined_call_operand.vmem [shape: f32[32,8], index: 4, kind: input, shape index: {}]   ;;  %s322_s5 = inlined_call_operand.vmem [shape: f32[1,8], index: 5, kind: input, shape index: {}]   ;;  %s323_s6 = inlined_call_operand.hbm [shape: f32[2,8], index: 6, kind: output, shape index: {0}]   ;;  %s324_s7 = inlined_call_operand.hbm [shape: s32[1,1], index: 7, kind: output, shape index: {1}]  }
   0x1   :  { %v32_v0 = vld [vmem:[%s319_s2 + $0x18] sm:$0xff]  ;;  %v31_v1 = vld [vmem:[%s319_s2 + $0x10] sm:$0xff]  ;;  %v27_v2 = vld [vmem:[%s318_s1] sm:$0x1] }
   0x2   :  { %53 = vmatpush.msra.mxu0 %v32_v0  ;;  %v30_v3 = vld [vmem:[%s319_s2 + $0x8] sm:$0xff] }
   0x3   :  { %14 = vsyncpa [#allocation4], 0  ;;  %v29_v4 = vld [vmem:[%s319_s2] sm:$0xff]  ;;  %v28_v5 = vunpack.c.l.bf16 %v27_v2  ;;  %vm37_vm0 = vcmask 261120   ;;  %v65_v6 = vld [vmem:[%s321_s4 + $0x18] sm:$0xff]  ;;  %vm108_vm1 = vcmask 57344   ;;  %v112_v20 = vlaneseq }
   0x4   :  { %54 = vmatpush.msra.mxu0 %v31_v1  ;;  %85 = vmatpush.msra.mxu1 %v65_v6  ;;  %v64_v7 = vld [vmem:[%s321_s4 + $0x10] sm:$0xff]  ;;  %v63_v8 = vld [vmem:[%s321_s4 + $0x8] sm:$0xff]  ;;  %v62_v9 = vld [vmem:[%s321_s4] sm:$0xff]  ;;  %vm93_vm4 = vcmask 58368   ;;  %s159_s4 = sshll.u32 %s324_s7, 4  ;;  %s228_s23 = smov [#allocation5]   ;;  %s160_s4 = int_to_ptr.hbm [resolvable:$true] %s159_s4 }
   0x5   :  { %v180_v10 = vld [vmem:[%s320_s3] ss:$0 sm:$0xff]  ;;  %v113_v21 = vand.u32 127, %v112_v20  ;;  %s229_s24 = smov [#allocation2]   ;;  %s150_s28 = sshll.u32 %s323_s6, 4  ;;  %s151_s28 = int_to_ptr.hbm [resolvable:$true] %s150_s28 }
   0x6   :  { %55 = vmatpush.msra.mxu0 %v30_v3  ;;  %86 = vmatpush.msra.mxu1 %v64_v7  ;;  %v181_v14 = vld [vmem:[%s322_s5] ss:$0 sm:$0xff]  ;;  %s148_s25 = sshll.u32 %s229_s24, 4  ;;  %s149_s25 = int_to_ptr.vmem [resolvable:$true] %s148_s25 }
   0x7   :  { %v106_v16 = vld [vmem:[%s317_s0] sm:$0x1] }
   0x8   :  { %56 = vmatpush.msra.mxu0 %v29_v4  ;;  %87 = vmatpush.msra.mxu1 %v63_v8 }
   0x9   :  { %174 = vmatmul.msk.f32.vlgmr.msra.gmra.mxu0 %vm37_vm0, %v28_v5 }
   0xa   :  { %88 = vmatpush.msra.mxu1 %v62_v9 }
  0x86   :  { %v58_v11 = vpop.f32.mrf.mxu0 }
  0x87   :  { %v59_v12 = vadd.f32 %v180_v10, %v58_v11 }
  0x89   :  { %182 = vtanh.f32 %v59_v12 }
  0x8f   :  { %v183_v13 = vpop.eup %182 }
  0x90   :  { %175 = vmatmul.msk.f32.vlgmr.msra.gmra.mxu1 %vm37_vm0, %v183_v13 }
 0x10d   :  { %v90_v15 = vpop.f32.mrf.mxu1 }
 0x10e   :  { %v91_v17 = vadd.f32 %v181_v14, %v90_v15 }
 0x110   :  { %v107_v18 = vadd.f32 %v106_v16, %v91_v17  ;;  %v94_v31 = vsel %vm93_vm4, %v91_v17, -inf }
 0x112   :  { %v109_v19 = vsel %vm108_vm1, %v107_v18, -inf }
 0x113   :  { %110 = vmax.xlane.f32.xlu0 %v109_v19 }
 0x186   :  { %v111_v22 = vpop.xlane.xlu0 %110 }
 0x187   :  { %vm114_vm2 = vcmp.ge.f32.partialorder %v107_v18, %v111_v22 }
 0x188   :  { %v115_v23 = vsel %vm114_vm2, %v113_v21, 8 }
 0x189   :  { %v116_v24 = vsel %vm108_vm1, %v115_v23, 2147483647 }
 0x18a   :  { %v118_v25 = vshra.s32 %v116_v24, 16  ;;  %v117_v27 = vand.u32 65535, %v116_v24 }
 0x18c   :  { %v120_v26 = vcvt.s32.f32 %v118_v25  ;;  %v119_v29 = vcvt.s32.f32 %v117_v27 }
 0x18e   :  { %121 = vmin.xlane.f32.xlu0 %v120_v26 }
 0x201   :  { %v122_v28 = vpop.xlane.xlu0 %121 }
 0x202   :  { %vm123_vm3 = vcmp.eq.f32.partialorder %v120_v26, %v122_v28  ;;  %v128_v32 = vcvt.f32.s32 %v122_v28 }
 0x203   :  { %v124_v30 = vsel %vm123_vm3, %v119_v29, inf }
 0x204   :  { %125 = vmin.xlane.f32.xlu1 %v124_v30  ;;  %v129_v34 = vshll.u32 %v128_v32, 16 }
 0x20c   :  { %95 = vmax.xlane.f32.xlu1 %v94_v31 }
 0x277   :  { %v126_v33 = vpop.xlane.xlu1 %125 }
 0x278   :  { %v127_v35 = vcvt.f32.s32 %v126_v33 }
 0x27a   :  { %v130_v36 = vadd.s32 %v129_v34, %v127_v35 }
 0x27c   :  { %v131_v37 = vrot.slane %v130_v36, 4 }
 0x27e   :  { %vm132_vm5 = vcmp.lt.s32.totalorder %v130_v36, %v131_v37 }
 0x27f   :  { %v96_v38 = vpop.xlane.xlu1 %95  ;;  %v133_v39 = vsel %vm132_vm5, %v130_v36, %v131_v37 }
 0x280   :  { %v97_v40 = vsub.f32 %v91_v17, %v96_v38  ;;  %v134_v41 = vrot.slane %v133_v39, 2 }
 0x282   :  { %v98_v42 = vmul.f32 1.442695, %v97_v40  ;;  %vm135_vm6 = vcmp.lt.s32.totalorder %v133_v39, %v134_v41 }
 0x283   :  { %v136_v43 = vsel %vm135_vm6, %v133_v39, %v134_v41 }
 0x284   :  { %184 = vpow2.f32 %v98_v42  ;;  %v137_v44 = vrot.slane %v136_v43, 1 }
 0x286   :  { %vm138_vm7 = vcmp.lt.s32.totalorder %v136_v43, %v137_v44 }
 0x287   :  { %v139_v45 = vsel %vm138_vm7, %v136_v43, %v137_v44 }
 0x288   :  { %176 = vpush %v139_v45 }
 0x28a   :  { %v185_v46 = vpop.eup %184 }
 0x28b   :  { %v100_v47 = vsel %vm93_vm4, %v185_v46, 0.0 }
 0x28c   :  { %101 = vadd.xlane.f32.xlu2 %v100_v47 }
 0x2b9   :  { %s177_s5 = spop %176 }
 0x2ba   :  { %142 = sst [smem:[#allocation5]] %s177_s5 }
 0x2bb   :  { %162 = dma.smem_to_hbm %s228_s23, 16, %s160_s4, [#allocation4]  }
 0x2ff   :  { %v102_v48 = vpop.xlane.xlu2 %101 }
 0x300   :  { %186 = vrcp.f32 %v102_v48 }
 0x306   :  { %v187_v49 = vpop.eup %186 }
 0x307   :  { %v104_v50 = vmul.f32 %v187_v49, %v185_v46 }
 0x309   :  { %105 = vst.msk [vmem:[#allocation2] sm:$0x3] %vm93_vm4, %v104_v50 }
 0x30a   :  { %153 = dma.vmem_to_hbm [thread:$0]  %s149_s25, 32, %s151_s28, [#allocation3]  }
 0x30b   :  { %224 = dma.done.wait [#allocation3], 32  }
 0x30c   :  { %225 = vsyncadd [#allocation3], 4294967264 }
 0x30d   :  { %226 = dma.done.wait [#allocation4], 16  }
 0x30e   :  { %227 = vsyncadd [#allocation4], 4294967280 }
 0x30f   :  { %171 = sfence }
 0x310   :  { %172 = vsyncpa [#allocation3], 1 }
 0x311   :  { %173 = vsyncpa [#allocation4], 1 }

</bundles_post_ra>
